<compile_context>
chip_gen: v6e
topology: v6e:2x2x1
jax: 0.10.0
libtpu: 0.0.40
codegen_flags: <defaults>
</compile_context>

<pallas_src>
import functools

import jax
import jax.numpy as jnp
from jax.experimental import pallas as pl
from jax.experimental.pallas import tpu as pltpu


# ----------------------------- Pallas kernels --------------------------------

def _mix_kernel_vpu(w_ref, x_ref, o_ref):
    """Channel mix for small C: unrolled broadcast multiply-adds on the VPU.

    w_ref: (C, C) f32, resident. x_ref / o_ref: (C, TILE_P) pixel tile.
    y[o, p] = sum_c w[o, c] * x[c, p]
    """
    w = w_ref[...]                                  # (C, C) f32
    x = x_ref[...]                                  # (C, T)
    c_dim = x.shape[0]
    # (C,1) lane-broadcast  *  (1,T) sublane-broadcast  ->  (C,T) per term.
    acc = w[:, 0:1] * x[0:1, :].astype(jnp.float32)
    for ci in range(1, c_dim):
        acc = acc + w[:, ci:ci + 1] * x[ci:ci + 1, :].astype(jnp.float32)
    o_ref[...] = acc.astype(o_ref.dtype)            # one full-width store


def _mix_kernel_mxu(w_ref, x_ref, o_ref):
    """Channel mix for larger C: MXU matmul with f32 accumulation."""
    o_ref[...] = jnp.dot(
        w_ref[...], x_ref[...].astype(jnp.float32),
        preferred_element_type=jnp.float32,
    ).astype(o_ref.dtype)


# ------------------------------ tiling helper ---------------------------------

def _pick_tile(p, max_tile=4096):
    """Largest lane-dense pixel tile: whole axis if small, else a multiple of
    128 that divides P (falls back to the full axis)."""
    if p <= max_tile or p % 128 != 0:
        return p
    for t in range(max_tile, 0, -128):
        if p % t == 0:
            return t
    return p


def _channel_mix(mat_f32, x_ncp, *, max_tile=4096):
    """y[n] = mat @ x[n] for x of shape (N, C, P), tiled over (N, P)."""
    n, c, p = x_ncp.shape
    tile_p = _pick_tile(p, max_tile)
    grid = (n, pl.cdiv(p, tile_p))
    kernel = _mix_kernel_vpu if c <= 8 else _mix_kernel_mxu

    # VMEM budget note: double-buffered working set is
    #   2 * (2 * C * tile_p * itemsize) + C*C*4  bytes
    # which is tiny here (C=4).  For big-C Glow blocks on v7x (64 MiB VMEM /
    # 32 MiB scoped default) or v5e (16 MiB scoped default), shrink max_tile
    # or raise vmem_limit_bytes accordingly.
    return pl.pallas_call(
        kernel,
        out_shape=jax.ShapeDtypeStruct((n, c, p), x_ncp.dtype),
        grid_spec=pltpu.PrefetchScalarGridSpec(
            num_scalar_prefetch=0,
            grid=grid,
            in_specs=[
                # Mixing matrix: resident across all grid steps (single DMA).
                pl.BlockSpec((c, c), lambda i, t: (0, 0)),
                # Activation tile: (1, C, tile_p) with the batch dim squeezed.
                pl.BlockSpec((None, c, tile_p), lambda i, t: (i, 0, t)),
            ],
            out_specs=pl.BlockSpec((None, c, tile_p), lambda i, t: (i, 0, t)),
        ),
        compiler_params=pltpu.CompilerParams(
            dimension_semantics=("parallel", "parallel"),
        ),
    )(mat_f32, x_ncp)


# ------------------------- wrapped bijector (glue) ----------------------------

def _inv1x1_conv_apply(weight, x, sum_ldj=None, reverse=False):
    """Concrete wrapped bijector: invertible 1x1 conv on NCHW input."""
    n, c, h, w = x.shape
    _, logabsdet = jnp.linalg.slogdet(weight.astype(jnp.float32))
    ldj = (h * w) * logabsdet  # per-sample log|det J|

    if reverse:
        # Keep the inverse in f32 (accumulation is f32 in-kernel; output cast
        # back to x.dtype only at the store).
        # TODO(synk): an LU-solve formulation would be safer for ill-conditioned W.
        mat = jnp.linalg.inv(weight.astype(jnp.float32))
        ldj = -ldj
    else:
        mat = weight.astype(jnp.float32)

    # NCHW -> (N, C, H*W) is a free, contiguous reshape (no transpose copies).
    x_ncp = x.reshape(n, c, h * w)
    y = _channel_mix(mat, x_ncp).reshape(n, c, h, w)

    if sum_ldj is None:
        return y, None
    return y, sum_ldj + ldj


# ------------------------------ InvertBijector --------------------------------

def invert_bijector_forward(weight, x, sum_ldj=None, reverse=False):
    """InvertBijector.forward: delegate to wrapped bijector with flipped reverse."""
    return _inv1x1_conv_apply(weight, x, sum_ldj=sum_ldj, reverse=not reverse)


# ---------------------------------- main ---------------------------------------

if __name__ == "__main__":
    N, C, H, W = 2, 4, 16, 16

    key = jax.random.PRNGKey(0)
    wkey, xkey = jax.random.split(key)

    # Deterministic parameter init (Glow-style: orthogonal * diag scaling so
    # log|det| is nonzero). Synthetic — no checkpoint loading.
    q, _ = jnp.linalg.qr(jax.random.normal(wkey, (C, C), dtype=jnp.float32))
    scales = jnp.array([1.5, 0.8, 1.2, 0.9], dtype=jnp.float32)
    weight = (q * scales[None, :]).astype(jnp.float32)  # (C_out, C_in)

    # Deterministic example inputs.
    x = jax.random.normal(xkey, (N, C, H, W), dtype=jnp.float32)
    sum_ldj = jnp.zeros((N,), dtype=jnp.float32)

    fwd = jax.jit(functools.partial(invert_bijector_forward, weight),
                  static_argnames=("reverse",))

    # InvertBijector default call (reverse=False) -> wrapped bijector inverse.
    y, new_sum_ldj = fwd(x, sum_ldj, reverse=False)
    y = jax.block_until_ready(y)
    new_sum_ldj = jax.block_until_ready(new_sum_ldj)

    # Reference check against plain-JAX einsum implementation.
    w_inv = jnp.linalg.inv(weight)
    y_ref = jnp.einsum("oc,nchw->nohw", w_inv, x)
    _, lad = jnp.linalg.slogdet(weight)
    ldj_ref = sum_ldj - (H * W) * lad
    assert jnp.allclose(y, y_ref, atol=1e-4, rtol=1e-4)
    assert jnp.allclose(new_sum_ldj, ldj_ref, atol=1e-4, rtol=1e-4)

    # Round trip through the other direction (reverse=True -> wrapped forward).
    x_rt, rt_ldj = fwd(y, new_sum_ldj, reverse=True)
    x_rt = jax.block_until_ready(x_rt)
    assert jnp.allclose(x_rt, x, atol=1e-4, rtol=1e-4)
    assert jnp.allclose(rt_ldj, sum_ldj, atol=1e-4, rtol=1e-4)

    print("KERNEL_OK")
</pallas_src>

<mosaic_0001>
module attributes {stable_mosaic.version = 11 : i64} {
  func.func @_mix_kernel_vpu(%arg0: i32, %arg1: i32, %arg2: memref<4x4xf32, #tpu.memory_space<vmem>>, %arg3: memref<1x4x256xf32, #tpu.memory_space<vmem>>, %arg4: memref<1x4x256xf32, #tpu.memory_space<vmem>>) attributes {dimension_semantics = [#tpu.dimension_semantics<parallel>, #tpu.dimension_semantics<parallel>], iteration_bounds = array<i64: 2, 1>, scalar_prefetch = 0 : i64, scratch_operands = 0 : i64, tpu.core_type = #tpu.core_type<tc>, window_params = [{pipeline_mode = #tpu.pipeline_mode<synchronous>, transform_indices = @transform_0, window_bounds = array<i64: 4, 4>}, {transform_indices = @transform_1, window_bounds = array<i64: 1, 4, 256>}, {transform_indices = @transform_2, window_bounds = array<i64: 1, 4, 256>}]} {
    %c0 = arith.constant 0 : index
    %c0_0 = arith.constant 0 : index
    %0 = vector.load %arg2[%c0, %c0_0] : memref<4x4xf32, #tpu.memory_space<vmem>>, vector<4x4xf32>
    %c0_1 = arith.constant 0 : index
    %c0_2 = arith.constant 0 : index
    %c0_3 = arith.constant 0 : index
    %1 = vector.load %arg3[%c0_1, %c0_2, %c0_3] : memref<1x4x256xf32, #tpu.memory_space<vmem>>, vector<1x4x256xf32>
    %2 = vector.shape_cast %1 : vector<1x4x256xf32> to vector<4x256xf32>
    %3 = vector.extract_strided_slice %0 {offsets = [0, 0], sizes = [4, 1], strides = [1, 1]} : vector<4x4xf32> to vector<4x1xf32>
    %4 = vector.extract_strided_slice %2 {offsets = [0, 0], sizes = [1, 256], strides = [1, 1]} : vector<4x256xf32> to vector<1x256xf32>
    %5 = vector.broadcast %3 : vector<4x1xf32> to vector<4x256xf32>
    %6 = vector.broadcast %4 : vector<1x256xf32> to vector<4x256xf32>
    %7 = arith.mulf %5, %6 : vector<4x256xf32>
    %8 = vector.extract_strided_slice %0 {offsets = [0, 1], sizes = [4, 1], strides = [1, 1]} : vector<4x4xf32> to vector<4x1xf32>
    %9 = vector.extract_strided_slice %2 {offsets = [1, 0], sizes = [1, 256], strides = [1, 1]} : vector<4x256xf32> to vector<1x256xf32>
    %10 = vector.broadcast %8 : vector<4x1xf32> to vector<4x256xf32>
    %11 = vector.broadcast %9 : vector<1x256xf32> to vector<4x256xf32>
    %12 = arith.mulf %10, %11 : vector<4x256xf32>
    %13 = arith.addf %7, %12 : vector<4x256xf32>
    %14 = vector.extract_strided_slice %0 {offsets = [0, 2], sizes = [4, 1], strides = [1, 1]} : vector<4x4xf32> to vector<4x1xf32>
    %15 = vector.extract_strided_slice %2 {offsets = [2, 0], sizes = [1, 256], strides = [1, 1]} : vector<4x256xf32> to vector<1x256xf32>
    %16 = vector.broadcast %14 : vector<4x1xf32> to vector<4x256xf32>
    %17 = vector.broadcast %15 : vector<1x256xf32> to vector<4x256xf32>
    %18 = arith.mulf %16, %17 : vector<4x256xf32>
    %19 = arith.addf %13, %18 : vector<4x256xf32>
    %20 = vector.extract_strided_slice %0 {offsets = [0, 3], sizes = [4, 1], strides = [1, 1]} : vector<4x4xf32> to vector<4x1xf32>
    %21 = vector.extract_strided_slice %2 {offsets = [3, 0], sizes = [1, 256], strides = [1, 1]} : vector<4x256xf32> to vector<1x256xf32>
    %22 = vector.broadcast %20 : vector<4x1xf32> to vector<4x256xf32>
    %23 = vector.broadcast %21 : vector<1x256xf32> to vector<4x256xf32>
    %24 = arith.mulf %22, %23 : vector<4x256xf32>
    %25 = arith.addf %19, %24 : vector<4x256xf32>
    %c0_4 = arith.constant 0 : index
    %c0_5 = arith.constant 0 : index
    %c0_6 = arith.constant 0 : index
    %26 = vector.load %arg4[%c0_4, %c0_5, %c0_6] : memref<1x4x256xf32, #tpu.memory_space<vmem>>, vector<1x4x256xf32>
    %27 = vector.shape_cast %26 : vector<1x4x256xf32> to vector<4x256xf32>
    %28 = vector.shape_cast %25 : vector<4x256xf32> to vector<1x4x256xf32>
    tpu.vector_store %arg4[%c0_4, %c0_5, %c0_6], %28 {strides = array<i32>} : memref<1x4x256xf32, #tpu.memory_space<vmem>>, vector<1x4x256xf32>,
    return
  }
  func.func @transform_0(%arg0: i32, %arg1: i32) -> (i32, i32) {
    %c0_i32 = arith.constant 0 : i32
    %c0_i32_0 = arith.constant 0 : i32
    %c0_i32_1 = arith.constant 0 : i32
    return %c0_i32, %c0_i32_0 : i32, i32
  }
  func.func @transform_1(%arg0: i32, %arg1: i32) -> (i32, i32, i32) {
    %c0_i32 = arith.constant 0 : i32
    %c0_i32_0 = arith.constant 0 : i32
    return %arg0, %c0_i32, %arg1 : i32, i32, i32
  }
  func.func @transform_2(%arg0: i32, %arg1: i32) -> (i32, i32, i32) {
    %c0_i32 = arith.constant 0 : i32
    %c0_i32_0 = arith.constant 0 : i32
    return %arg0, %c0_i32, %arg1 : i32, i32, i32
  }
}

</mosaic_0001>

<bundles_post_ra>
// kernel: custom-call.13
= control target key start
LH: loop header
LB: loop body
LE: loop exit
PB: predicated region body
PF: predicated region fallthrough
CT: control target
= control target key end

     0   :  { %5 = vsyncpa [#allocation2], 0  ;;  %s550_s0 = inlined_call_operand.hbm [shape: f32[4,4], index: 0, kind: input, shape index: {}]   ;;  %s551_s1 = inlined_call_operand.vmem [shape: f32[4,4], index: 1, kind: output, shape index: {0}]   ;;  %s552_s2 = inlined_call_operand.hbm [shape: s32[4], index: 2, kind: output, shape index: {1}]   ;;  %s553_s3 = inlined_call_operand.vmem [shape: s32[4], index: 3, kind: output, shape index: {2}]  }
   0x1   :  { %6 = vsyncpa [#allocation3], 0  ;;  %s479_s12 = smov [#allocation1]  }
   0x2   :  { %s10_s13 = sshll.u32 %s479_s12, 4  ;;  %s11_s13 = int_to_ptr.vmem [resolvable:$true] %s10_s13 }
   0x3   :  { %s435_s14 = scalar_lea.vmem %s11_s13, 64  ;;  %p440_p1 = scmp.lt.s32.totalorder %s11_s13, %s11_s13 }
   0x4   :  { %p436_p0 = scmp.ne.s32.totalorder %s11_s13, %s435_s14  ;;  %p441_p2 = scmp.lt.s32.totalorder %s435_s14, %s435_s14 }
   0x6   :  { %p442_p3 = por %p441_p2, %p440_p1 }
   0x8   :  { %p443_p4 = pnand %p442_p3, %p436_p0 }
   0xa   :  { %446 = shalt.err (!%p443_p4)
}
   0xb   :  { %13 = dma.hbm_to_vmem [thread:$0]  %s550_s0, 64, %s11_s13, [#allocation2]  }
   0xc   :  { %471 = dma.done.wait [#allocation2], 64  }
   0xd   :  { %472 = vsyncadd [#allocation2], 4294967232  ;;  %v23_v0 = vlaneseq  ;;  %v480_v1 = vmov 0   ;;  %v18_v3 = vld [vmem:[#allocation1] sm:$0xf]  ;;  %s509_s17 = smov 0  }
   0xe   :  { %22 = vst [vmem:[#allocation6] sm:$0x1] %v480_v1  ;;  %19 = vst [vmem:[#allocation0] sm:$0xf] %v18_v3 }
   0xf   :  { %v506_v2 = vshrl.u32 %v23_v0, 7 }
  0x11   :  { %27 = vst [vmem:[#allocation10] sm:$0xff] %v506_v2 }
  0x15   :  { %v20_v4 = vld [vmem:[#allocation0] sm:$0xff] }
  0x16   :  { %21 = vst [vmem:[#allocation4] sm:$0xff] %v20_v4 }
  0x17 LB: > { %vm43_vm0 = vcmp.lt.s32.totalorder %v506_v2, 4  ;;  %v516_v7 = vstv %s477_s17  ;;  %s84_s0 = ssub.s32 128, %s477_s17  ;;  %v90_v37 = vand.u32 127, %v23_v0  ;;  %v93_v39 = vld [vmem:[#allocation6] ss:$0 sm:$0xff]  ;;  %s96_s18 = scalar_lea.vmem [#allocation4], %s477_s17  ;;  %s477_s17 = sphi %s509_s17, %s33_s17  }
  0x18   : > { %vm42_vm1 = vcmp.ge.s32.totalorder %v506_v2, %v516_v7  ;;  %s102_s20 = scalar_lea.vmem [#allocation10], %s477_s17  ;;  %vm122_vm15 = vcmp.gt.s32.totalorder %v506_v2, %v516_v7  ;;  %s33_s17 = sadd.s32 1, %s477_s17  }
  0x19   : > { %vm44_vm3 = vmand %vm42_vm1, %vm43_vm0  ;;  %vm114_vm12 = vcmp.gt.s32.totalorder %v90_v37, %v516_v7  ;;  %vm91_vm13 = vcmp.eq.s32.totalorder %v90_v37, %v516_v7  ;;  %v104_v41 = vld [vmem:[%s102_s20] ss:$0 sm:$0xff]  ;;  %p30_p5 = scmp.ge.s32.totalorder %s33_s17, 4  }
  0x1a   : > { %vm126_vm1 = vmand %vm122_vm15, %vm91_vm13  ;;  %s481_s23 = smov (%p30_p5), [#allocation7]  }
  0x1b   :  { %s274_s24 = sshll.u32 (%p30_p5), %s481_s23, 4  ;;  %s275_s24 = int_to_ptr.vmem [resolvable:$true] %s274_s24 }
  0x1c   :  { %s447_s27 = scalar_lea.vmem (%p30_p5), %s275_s24, 16  ;;  %s451_s28 = scalar_lea.vmem (%p30_p5), %s275_s24, 32 }
  0x1d   : > { %v38_v5 = vld [vmem:[#allocation4] sm:$0xff]  ;;  %v98_v40 = vld [vmem:[%s96_s18] ss:$0 sm:$0xff]  ;;  %p448_p6 = scmp.ne.s32.totalorder (%p30_p5), %s275_s24, %s447_s27  ;;  %p452_p7 = scmp.lt.s32.totalorder (%p30_p5), %s275_s24, %s275_s24 }
  0x1e   : > { %v39_v6 = vand.u32 2147483647, %v38_v5  ;;  %p453_p8 = scmp.lt.s32.totalorder (%p30_p5), %s451_s28, %s447_s27 }
  0x20   : > { %vm405_vm2 = vcmp.gt.f32.partialorder %v39_v6, -inf  ;;  %p454_p9 = por (%p30_p5), %p453_p8, %p452_p7 }
  0x21   : > { %vm46_vm4 = vmand %vm44_vm3, %vm405_vm2 }
  0x22   : > { %v47_v8 = vsel %vm46_vm4, %v506_v2, %v516_v7  ;;  %v48_v9 = vsel %vm46_vm4, %v39_v6, -inf  ;;  %p455_p10 = pnand (%p30_p5), %p454_p9, %p448_p6 }
  0x23   : > { %v49_v10 = vrot.slane %v48_v9, 1  ;;  %v50_v11 = vrot.slane %v47_v8, 1 }
  0x25   : > { %vm51_vm5 = vcmp.ge.f32.partialorder %v49_v10, %v48_v9  ;;  %v54_v12 = vrot.slane %v49_v10, 1  ;;  %v55_v13 = vrot.slane %v50_v11, 1 }
  0x26   : > { %v52_v14 = vsel %vm51_vm5, %v49_v10, %v48_v9  ;;  %v53_v15 = vsel %vm51_vm5, %v50_v11, %v47_v8 }
  0x27   : > { %vm56_vm6 = vcmp.ge.f32.partialorder %v54_v12, %v52_v14  ;;  %v59_v16 = vrot.slane %v54_v12, 1  ;;  %v60_v17 = vrot.slane %v55_v13, 1 }
  0x28   : > { %v57_v18 = vsel %vm56_vm6, %v54_v12, %v52_v14  ;;  %v58_v19 = vsel %vm56_vm6, %v55_v13, %v53_v15 }
  0x29   : > { %vm61_vm7 = vcmp.ge.f32.partialorder %v59_v16, %v57_v18  ;;  %v64_v20 = vrot.slane %v59_v16, 1  ;;  %v65_v21 = vrot.slane %v60_v17, 1 }
  0x2a   : > { %v62_v22 = vsel %vm61_vm7, %v59_v16, %v57_v18  ;;  %v63_v23 = vsel %vm61_vm7, %v60_v17, %v58_v19 }
  0x2b   : > { %vm66_vm8 = vcmp.ge.f32.partialorder %v64_v20, %v62_v22  ;;  %v69_v24 = vrot.slane %v64_v20, 1  ;;  %v70_v25 = vrot.slane %v65_v21, 1 }
  0x2c   : > { %v67_v26 = vsel %vm66_vm8, %v64_v20, %v62_v22  ;;  %v68_v27 = vsel %vm66_vm8, %v65_v21, %v63_v23 }
  0x2d   : > { %vm71_vm9 = vcmp.ge.f32.partialorder %v69_v24, %v67_v26  ;;  %v74_v28 = vrot.slane %v69_v24, 1  ;;  %v75_v29 = vrot.slane %v70_v25, 1 }
  0x2e   : > { %v72_v30 = vsel %vm71_vm9, %v69_v24, %v67_v26  ;;  %v73_v31 = vsel %vm71_vm9, %v70_v25, %v68_v27 }
  0x2f   : > { %vm76_vm10 = vcmp.ge.f32.partialorder %v74_v28, %v72_v30  ;;  %v79_v32 = vrot.slane %v74_v28, 1  ;;  %v80_v33 = vrot.slane %v75_v29, 1 }
  0x30   : > { %v77_v34 = vsel %vm76_vm10, %v74_v28, %v72_v30  ;;  %v78_v35 = vsel %vm76_vm10, %v75_v29, %v73_v31 }
  0x31   : > { %vm81_vm11 = vcmp.ge.f32.partialorder %v79_v32, %v77_v34 }
  0x32   : > { %v83_v36 = vsel %vm81_vm11, %v80_v33, %v78_v35 }
  0x33   : > { %85 = vrot.lane.b32.xlu0 %v83_v36, %s84_s0 }
  0xa5   : > { %v86_v38 = vpop.permute.xlu0 %85 }
  0xa6   : > { %412 = vpush %v86_v38 }
  0xd7   : > { %s413_s19 = spop %412 }
  0xd8   : > { %v92_v42 = vstv %s413_s19  ;;  %s97_s21 = scalar_lea.vmem [#allocation4], %s413_s19  ;;  %s103_s22 = scalar_lea.vmem [#allocation10], %s413_s19 }
  0xd9   : > { %v99_v43 = vld [vmem:[%s97_s21] ss:$0 sm:$0xff]  ;;  %v94_v45 = vsel %vm91_vm13, %v92_v42, %v93_v39 }
  0xda   : > { %v105_v44 = vld [vmem:[%s103_s22] ss:$0 sm:$0xff]  ;;  %100 = vst [vmem:[%s97_s21] sm:$0x1] %v98_v40  ;;  %vm108_vm14 = vcmp.ne.f32.partialorder %v99_v43, 0.0  ;;  %95 = vst [vmem:[#allocation6] sm:$0x1] %v94_v45 }
  0xdb   : > { %106 = vst [vmem:[%s103_s22] sm:$0x1] %v104_v41  ;;  %101 = vst [vmem:[%s96_s18] sm:$0x1] %v99_v43  ;;  %v115_v52 = vsel %vm114_vm12, %v99_v43, 0.0 }
  0xdc   : > { %107 = vst [vmem:[%s102_s20] sm:$0x1] %v105_v44  ;;  %vm109_vm0 = vmand %vm91_vm13, %vm108_vm14 }
  0xdd   : > { %v110_v46 = vsel %vm109_vm0, %v99_v43, 1.0 }
  0xde   : > { %v123_v47 = vsel %vm122_vm15, %v110_v46, 1.0 }
  0xdf   : > { %425 = vrcp.f32 %v123_v47 }
  0xe1   :  { %v194_v58 = vld [vmem:[#allocation6] sm:$0x1] (%p30_p5) }
  0xe2   : > { %v119_v49 = vld [vmem:[#allocation4] sm:$0xff]  ;;  %197 = vst [vmem:[#allocation7] sm:$0x1] (%p30_p5), %v194_v58 }
  0xe3   :  { %v133_v56 = vld [vmem:[#allocation10] sm:$0xff] (%p30_p5) }
  0xec   : > { %v426_v48 = vpop.eup %425 }
  0xed   : > { %v125_v50 = vmul.f32 %v426_v48, %v119_v49 }
  0xef   : > { %v127_v51 = vsel %vm126_vm1, %v125_v50, 0.0 }
  0xf0   : > { %128 = vadd.xlane.f32.xlu0 %v127_v51 }
 0x11d   :  { %149 = vxpose.xlu0.b32.start.end [1/1] (short) (narrow) (%p30_p5), %v133_v56, 8 }
 0x179   : > { %v129_v53 = vpop.xlane.xlu0 %128 }
 0x17a   : > { %v130_v54 = vmul.f32 %v129_v53, %v115_v52  ;;  %32 = sbr.rel (!%p30_p5) target bundleno = 23 (0x17), region = 112 }
 0x17c   : > { %v131_v55 = vsub.f32 %v125_v50, %v130_v54 }
 0x17e   : > { %132 = vst [vmem:[#allocation4] sm:$0xff] %v131_v55 }
 0x185   :  { %v186_v57 = vld [vmem:[#allocation4] sm:$0xf] }
 0x186   :  { %189 = vst [vmem:[#allocation5] sm:$0xf] %v186_v57 }
 0x18d   :  { %v267_v59 = vld [vmem:[#allocation5] sm:$0xf] }
 0x18e   :  { %268 = vst [vmem:[%s551_s1] sm:$0xf] %v267_v59 }
 0x18f   :  { %458 = shalt.err (!%p455_p10)
}
 0x190   :  { %277 = dma.vmem_to_hbm [thread:$0]  %s275_s24, 16, %s552_s2, [#allocation3]  }
 0x199   :  { %v165_v60 = vpop.trf.xlu0 }
 0x19a   :  { %181 = vst [vmem:[#allocation8] sm:$0x1] %v165_v60 }
 0x1a1   :  { %v202_v61 = vld [vmem:[#allocation8] sm:$0x1] }
 0x1a2   :  { %205 = vst [vmem:[#allocation9] sm:$0x1] %v202_v61 }
 0x1a9   :  { %v341_v62 = vld [vmem:[#allocation9] sm:$0x1] }
 0x1aa   :  { %342 = vst [vmem:[%s553_s3] sm:$0x1] %v341_v62 }
 0x1ab   :  { %473 = dma.done.wait [#allocation3], 16  }
 0x1ac   :  { %474 = vsyncadd [#allocation3], 4294967280 }
 0x1ad   :  { %348 = vsyncpa [#allocation2], 1 }
 0x1ae   :  { %349 = vsyncpa [#allocation3], 1 }

// kernel: custom-call.9
= control target key start
LH: loop header
LB: loop body
LE: loop exit
PB: predicated region body
PF: predicated region fallthrough
CT: control target
= control target key end

     0   :  { %v40_v1 = vlaneseq  ;;  %v154_v11 = vmov -1.0   ;;  %s171_s0 = inlined_call_operand.vmem [shape: f32[1,4,4], index: 0, kind: input, shape index: {}]   ;;  %s172_s1 = inlined_call_operand.vmem [shape: f32[1,4,4], index: 1, kind: output, shape index: {}]  }
   0x1   :  { %v18_v0 = vld [vmem:[%s171_s0] sm:$0xf] }
   0x2   :  { %19 = vst [vmem:[#allocation1] sm:$0xf] %v18_v0  ;;  %v41_v3 = vand.u32 127, %v40_v1  ;;  %v44_v4 = vshrl.u32 %v40_v1, 7 }
   0x4   :  { %vm42_vm0 = vcmp.lt.s32.totalorder %v41_v3, 4  ;;  %vm51_vm1 = vcmp.le.s32.totalorder %v44_v4, %v41_v3  ;;  %vm46_vm2 = vcmp.eq.s32.totalorder %v44_v4, %v41_v3  ;;  %vm65_vm4 = vcmp.eq.s32.totalorder %v41_v3, 3 }
   0x5   :  { %vm52_vm3 = vmand %vm51_vm1, %vm42_vm0  ;;  %vm62_vm5 = vcmp.eq.s32.totalorder %v41_v3, %v44_v4  ;;  %v66_v12 = vsel %vm65_vm4, 1.0, %v154_v11  ;;  %vm73_vm6 = vcmp.eq.s32.totalorder %v41_v3, 2  ;;  %vm83_vm7 = vcmp.eq.s32.totalorder %v41_v3, 1 }
   0x6   :  { %v67_v13 = vsel %vm62_vm5, %v66_v12, 0.0  ;;  %vm92_vm8 = vcmp.eq.s32.totalorder %v41_v3, 0 }
   0x9   :  { %v38_v2 = vld [vmem:[#allocation1] sm:$0xf] }
   0xa   :  { %39 = vst [vmem:[#allocation0] sm:$0xf] %v38_v2 }
  0x11   :  { %v47_v5 = vld [vmem:[#allocation0] sm:$0xff] }
  0x12   :  { %v48_v6 = vsel %vm46_vm2, %v47_v5, 0.0  ;;  %v53_v7 = vsel %vm52_vm3, %v47_v5, 0.0 }
  0x13   :  { %49 = vadd.xlane.f32.xlu0 %v48_v6 }
  0x9c   :  { %v50_v8 = vpop.xlane.xlu0 %49 }
  0x9d   :  { %152 = vrcp.f32 %v50_v8  ;;  %vm99_vm9 = vweird.f32 %v50_v8 }
  0xaa   :  { %v153_v9 = vpop.eup %152 }
  0xab   :  { %v55_v10 = vmul.f32 %v153_v9, %v53_v7 }
  0xad   :  { %56 = vst [vmem:[#allocation4] sm:$0xff] %v55_v10 }
  0xb4   :  { %v69_v14 = vld [vmem:[#allocation4 + $0x2] ss:$0 sm:$0xff]  ;;  %v79_v17 = vld [vmem:[#allocation4 + $0x1] ss:$0 sm:$0xff]  ;;  %v88_v22 = vld [vmem:[#allocation4] ss:$0 sm:$0xff] }
  0xb5   :  { %v70_v15 = vxor.u32 2147483648, %v69_v14  ;;  %v80_v19 = vxor.u32 2147483648, %v79_v17  ;;  %v89_v24 = vxor.u32 2147483648, %v88_v22 }
  0xb7   :  { %v74_v16 = vmul.f32 %v70_v15, %v67_v13 }
  0xb9   :  { %75 = vadd.xlane.f32.xlu0 %v74_v16 }
 0x142   :  { %v76_v18 = vpop.xlane.xlu0 %75 }
 0x143   :  { %v77_v20 = vsel %vm73_vm6, %v76_v18, %v67_v13 }
 0x144   :  { %v84_v21 = vmul.f32 %v80_v19, %v77_v20 }
 0x146   :  { %85 = vadd.xlane.f32.xlu1 %v84_v21 }
 0x1cf   :  { %v86_v23 = vpop.xlane.xlu1 %85 }
 0x1d0   :  { %v87_v25 = vsel %vm83_vm7, %v86_v23, %v77_v20 }
 0x1d1   :  { %v93_v26 = vmul.f32 %v89_v24, %v87_v25 }
 0x1d3   :  { %94 = vadd.xlane.f32.xlu1 %v93_v26 }
 0x25c   :  { %v95_v27 = vpop.xlane.xlu1 %94 }
 0x25d   :  { %v96_v28 = vsel %vm92_vm8, %v95_v27, %v87_v25 }
 0x25e   :  { %v98_v29 = vmul.f32 %v153_v9, %v96_v28 }
 0x260   :  { %v100_v30 = vsel %vm99_vm9, %v96_v28, %v98_v29 }
 0x261   :  { %101 = vst [vmem:[#allocation2] sm:$0xff] %v100_v30 }
 0x268   :  { %v106_v31 = vld [vmem:[#allocation2] sm:$0xf] }
 0x269   :  { %109 = vst [vmem:[#allocation3] sm:$0xf] %v106_v31 }
 0x270   :  { %v126_v32 = vld [vmem:[#allocation3] sm:$0xf] }
 0x271   :  { %127 = vst [vmem:[%s172_s1] sm:$0xf] %v126_v32 }

// kernel: custom-call.10
= control target key start
LH: loop header
LB: loop body
LE: loop exit
PB: predicated region body
PF: predicated region fallthrough
CT: control target
= control target key end

     0   :  { %v40_v1 = vlaneseq  ;;  %v155_v11 = vmov -1.0   ;;  %s172_s0 = inlined_call_operand.vmem [shape: f32[1,4,4], index: 0, kind: input, shape index: {}]   ;;  %s173_s1 = inlined_call_operand.vmem [shape: f32[1,4,4], index: 1, kind: output, shape index: {}]  }
   0x1   :  { %v18_v0 = vld [vmem:[%s172_s0] sm:$0xf] }
   0x2   :  { %19 = vst [vmem:[#allocation1] sm:$0xf] %v18_v0  ;;  %v41_v3 = vand.u32 127, %v40_v1  ;;  %v44_v4 = vshrl.u32 %v40_v1, 7 }
   0x4   :  { %vm42_vm0 = vcmp.lt.s32.totalorder %v41_v3, 4  ;;  %vm51_vm1 = vcmp.ge.s32.totalorder %v44_v4, %v41_v3  ;;  %vm46_vm2 = vcmp.eq.s32.totalorder %v44_v4, %v41_v3  ;;  %vm65_vm4 = vcmp.eq.s32.totalorder %v41_v3, 0 }
   0x5   :  { %vm52_vm3 = vmand %vm51_vm1, %vm42_vm0  ;;  %vm62_vm5 = vcmp.eq.s32.totalorder %v41_v3, %v44_v4  ;;  %v66_v12 = vsel %vm65_vm4, 1.0, %v155_v11  ;;  %vm73_vm6 = vcmp.eq.s32.totalorder %v41_v3, 1  ;;  %vm83_vm7 = vcmp.eq.s32.totalorder %v41_v3, 2 }
   0x6   :  { %v67_v13 = vsel %vm62_vm5, %v66_v12, 0.0  ;;  %vm93_vm8 = vcmp.eq.s32.totalorder %v41_v3, 3 }
   0x9   :  { %v38_v2 = vld [vmem:[#allocation1] sm:$0xf] }
   0xa   :  { %39 = vst [vmem:[#allocation0] sm:$0xf] %v38_v2 }
  0x11   :  { %v47_v5 = vld [vmem:[#allocation0] sm:$0xff] }
  0x12   :  { %v48_v6 = vsel %vm46_vm2, %v47_v5, 0.0  ;;  %v53_v7 = vsel %vm52_vm3, %v47_v5, 0.0 }
  0x13   :  { %49 = vadd.xlane.f32.xlu0 %v48_v6 }
  0x9c   :  { %v50_v8 = vpop.xlane.xlu0 %49 }
  0x9d   :  { %153 = vrcp.f32 %v50_v8  ;;  %vm100_vm9 = vweird.f32 %v50_v8 }
  0xaa   :  { %v154_v9 = vpop.eup %153 }
  0xab   :  { %v55_v10 = vmul.f32 %v154_v9, %v53_v7 }
  0xad   :  { %56 = vst [vmem:[#allocation4] sm:$0xff] %v55_v10 }
  0xb4   :  { %v69_v14 = vld [vmem:[#allocation4 + $0x1] ss:$0 sm:$0xff]  ;;  %v79_v17 = vld [vmem:[#allocation4 + $0x2] ss:$0 sm:$0xff]  ;;  %v89_v22 = vld [vmem:[#allocation4 + $0x3] ss:$0 sm:$0xff] }
  0xb5   :  { %v70_v15 = vxor.u32 2147483648, %v69_v14  ;;  %v80_v19 = vxor.u32 2147483648, %v79_v17  ;;  %v90_v24 = vxor.u32 2147483648, %v89_v22 }
  0xb7   :  { %v74_v16 = vmul.f32 %v70_v15, %v67_v13 }
  0xb9   :  { %75 = vadd.xlane.f32.xlu0 %v74_v16 }
 0x142   :  { %v76_v18 = vpop.xlane.xlu0 %75 }
 0x143   :  { %v77_v20 = vsel %vm73_vm6, %v76_v18, %v67_v13 }
 0x144   :  { %v84_v21 = vmul.f32 %v80_v19, %v77_v20 }
 0x146   :  { %85 = vadd.xlane.f32.xlu1 %v84_v21 }
 0x1cf   :  { %v86_v23 = vpop.xlane.xlu1 %85 }
 0x1d0   :  { %v87_v25 = vsel %vm83_vm7, %v86_v23, %v77_v20 }
 0x1d1   :  { %v94_v26 = vmul.f32 %v90_v24, %v87_v25 }
 0x1d3   :  { %95 = vadd.xlane.f32.xlu1 %v94_v26 }
 0x25c   :  { %v96_v27 = vpop.xlane.xlu1 %95 }
 0x25d   :  { %v97_v28 = vsel %vm93_vm8, %v96_v27, %v87_v25 }
 0x25e   :  { %v99_v29 = vmul.f32 %v154_v9, %v97_v28 }
 0x260   :  { %v101_v30 = vsel %vm100_vm9, %v97_v28, %v99_v29 }
 0x261   :  { %102 = vst [vmem:[#allocation2] sm:$0xff] %v101_v30 }
 0x268   :  { %v107_v31 = vld [vmem:[#allocation2] sm:$0xf] }
 0x269   :  { %110 = vst [vmem:[#allocation3] sm:$0xf] %v107_v31 }
 0x270   :  { %v127_v32 = vld [vmem:[#allocation3] sm:$0xf] }
 0x271   :  { %128 = vst [vmem:[%s173_s1] sm:$0xf] %v127_v32 }

// kernel: invert_bijector_forward.1
= control target key start
LH: loop header
LB: loop body
LE: loop exit
PB: predicated region body
PF: predicated region fallthrough
CT: control target
= control target key end

     0   :  { %s470_s9 = smov 0   ;;  %s472_s10 = smov 0   ;;  %s513_s0 = inlined_call_operand.vmem [shape: f32[4,4], index: 0, kind: input, shape index: {}]   ;;  %s514_s1 = inlined_call_operand.vmem [shape: f32[2,4,256], index: 1, kind: input, shape index: {}]   ;;  %s515_s2 = inlined_call_operand.vmem [shape: f32[2,4,256], index: 2, kind: output, shape index: {}]  }
   0x1   :  { %s474_s11 = smov 0  }
   0x2 LB: > { %s24_s12 = sadd.s32 1, %s445_s10  ;;  %p385_p0 = scmp.ge.s32.totalorder %s449_s11, 1  ;;  %s449_s11 = sphi %s474_s11, %s12_s11   ;;  %s445_s10 = sphi %s472_s10, %s517_s10   ;;  %s441_s9 = sphi %s470_s9, %s516_s9  }
   0x3   : > { %p26_p1 = scmp.ge.s32.totalorder %s24_s12, 2  ;;  %p133_p2 = scmp.lt.s32.totalorder %s449_s11, 3 }
   0x5   : > { %s519_s12 = smov (%p26_p1, %s24_s12), 0  ;;  %p134_p3 = pnand %p385_p0, %p133_p2 }
   0x6   : > { %p164_p4 = scmp.lt.s32.totalorder (!%p134_p3), %s441_s9, 1 }
   0x7   : > { %137 = sbr.rel (%p134_p3) target bundleno = 154 (0x9a), region = 28 }
   0xc   : > { %v183_v0 = vld [vmem:[%s513_s0] sm:$0xf]  ;;  %v451_v1 = vmov 0   ;;  %v452_v2 = vmov 2   ;;  %v453_v3 = vmov 1   ;;  %v454_v4 = vmov 3  }
   0xd   : > { %422 = vset.pattern.permute.xlu0 %v451_v1  ;;  %424 = vset.pattern.permute.xlu1 %v452_v2  ;;  %s521_s9 = smov (!%p164_p4, %s441_s9), 1  ;;  %v191_v5 = vlaneseq }
   0xe   : > { %187 = vperm.xlu0 %422, %v183_v0   ;;  %238 = vperm.xlu1 %424, %v183_v0   ;;  %s392_s15 = sshll.u32 %s521_s9, 3 }
   0xf   : > { %v192_v6 = vshrl.u32 %v191_v5, 7  ;;  %s171_s18 = scalar_lea.vmem %s514_s1, %s392_s15  ;;  %s181_s21 = scalar_lea.vmem %s515_s2, %s392_s15 }
  0x10   : > { %v184_v11 = vld [vmem:[%s171_s18] sm:$0xff] }
  0x11   : > { %v193_v7 = vsub.s32 0, %v192_v6  ;;  %v197_v8 = vsub.s32 4, %v192_v6  ;;  %v217_v9 = vsub.s32 1, %v192_v6  ;;  %v221_v10 = vsub.s32 5, %v192_v6 }
  0x12   : > { %423 = vset.pattern.permute.xlu0 %v453_v3  ;;  %425 = vset.pattern.permute.xlu1 %v454_v4  ;;  %v243_v12 = vsub.s32 2, %v192_v6  ;;  %v247_v13 = vsub.s32 6, %v192_v6  ;;  %v269_v14 = vsub.s32 3, %v192_v6  ;;  %v273_v15 = vsub.s32 7, %v192_v6 }
  0x13   : > { %212 = vperm.xlu0 %423, %v183_v0   ;;  %264 = vperm.xlu1 %425, %v183_v0   ;;  %v194_v16 = vrot.slane %v184_v11, %v193_v7  ;;  %v198_v17 = vrot.slane %v184_v11, %v197_v8  ;;  %v218_v18 = vrot.slane %v184_v11, %v217_v9 }
  0x14   : > { %v222_v19 = vrot.slane %v184_v11, %v221_v10  ;;  %v244_v20 = vrot.slane %v184_v11, %v243_v12  ;;  %v248_v21 = vrot.slane %v184_v11, %v247_v13  ;;  %v270_v24 = vrot.slane %v184_v11, %v269_v14 }
  0x15   : > { %v274_v25 = vrot.slane %v184_v11, %v273_v15  ;;  %v204_v26 = vrot.slane %v194_v16, %v193_v7  ;;  %v208_v27 = vrot.slane %v198_v17, %v193_v7  ;;  %v228_v28 = vrot.slane %v218_v18, %v217_v9 }
  0x16   : > { %v232_v29 = vrot.slane %v222_v19, %v217_v9  ;;  %v254_v30 = vrot.slane %v244_v20, %v243_v12  ;;  %v258_v31 = vrot.slane %v248_v21, %v243_v12  ;;  %v280_v32 = vrot.slane %v270_v24, %v269_v14 }
  0x17   : > { %426 = vset.pattern.permute.xlu0 %v454_v4  ;;  %v284_v33 = vrot.slane %v274_v25, %v269_v14 }
  0x89   : > { %v188_v22 = vpop.permute.xlu0 %187  ;;  %v239_v23 = vpop.permute.xlu1 %238 }
  0x8a   : > { %v209_v36 = vmul.f32 %v204_v26, %v188_v22  ;;  %v210_v37 = vmul.f32 %v208_v27, %v188_v22  ;;  %v259_v40 = vmul.f32 %v254_v30, %v239_v23  ;;  %v260_v41 = vmul.f32 %v258_v31, %v239_v23 }
  0x8e   : > { %v213_v34 = vpop.permute.xlu0 %212  ;;  %v265_v35 = vpop.permute.xlu1 %264 }
  0x8f   : > { %v233_v38 = vmul.f32 %v228_v28, %v213_v34  ;;  %v234_v39 = vmul.f32 %v232_v29, %v213_v34  ;;  %v285_v44 = vmul.f32 %v280_v32, %v265_v35  ;;  %v286_v45 = vmul.f32 %v284_v33, %v265_v35 }
  0x91   : > { %v235_v42 = vadd.f32 %v233_v38, %v209_v36  ;;  %v236_v43 = vadd.f32 %v234_v39, %v210_v37 }
  0x93   : > { %v261_v46 = vadd.f32 %v259_v40, %v235_v42  ;;  %v262_v47 = vadd.f32 %v260_v41, %v236_v43 }
  0x95   : > { %v287_v48 = vadd.f32 %v285_v44, %v261_v46  ;;  %v288_v49 = vadd.f32 %v286_v45, %v262_v47 }
  0x97   : > { %v291_v50 = vcombine.low %v287_v48, %v288_v49 }
  0x99   : > { %293 = vst [vmem:[%s181_s21] sm:$0xff] %v291_v50 }
  0x9a PF: > { %s12_s11 = sadd.s32 1, %s449_s11   ;;  %s516_s9 = smov %s445_s10 }
  0x9b   : > { %p9_p5 = scmp.ge.s32.totalorder %s12_s11, 4   ;;  %s517_s10 = smov %s519_s12 }
  0x9d   :  { %11 = sbr.rel (!%p9_p5) target bundleno = 2 (0x2), region = 58 }

</bundles_post_ra>
